<compile_context>
chip_gen: v7x
topology: tpu7x:2x2x1
jax: 0.10.0
libtpu: 0.0.40
codegen_flags: <defaults>
</compile_context>

<pallas_src>
import functools

import jax
import jax.numpy as jnp
from jax import lax
from jax.experimental import pallas as pl
from jax.experimental.pallas import tpu as pltpu


def _tcn_kernel(cur_ref, halo_ref, w_ref, b_ref, o_ref, rhs_ref, *,
                kernel_size, dilation, pad):
    # cur_ref : (1, C_in, TT)    input columns [t*TT, t*TT + TT)
    # halo_ref: (1, C_in, HL)    input columns [t*TT - HL, t*TT)  (zeroed for t == 0)
    # w_ref   : (C_out, K*C_in)  folded weight: w2[co, k*C_in + ci] = weight[co, ci, k]
    # b_ref   : (C_out, 1)
    # o_ref   : (1, C_out, TT)
    # rhs_ref : (K*C_in, TT)     VMEM scratch for the in-kernel im2col
    C_in = cur_ref.shape[1]
    TT = cur_ref.shape[2]

    cur = cur_ref[0]                                              # (C_in, TT)

    if pad > 0:
        halo = halo_ref[0]                                        # (C_in, HL)
        # First time tile has no causal history -> zeros (the causal left pad).
        halo = jnp.where(pl.program_id(1) == 0, jnp.zeros_like(halo), halo)
        left = halo.shape[1]
        pieces = [halo, cur]
        if pad > left:        # only possible in single-tile mode (pad >= T)
            pieces = [jnp.zeros((C_in, pad - left), cur.dtype)] + pieces
            left = pad
        full_x = jnp.concatenate(pieces, axis=-1)                 # (C_in, left + TT)
    else:
        full_x = cur
        left = 0

    # In-kernel im2col: tap k is a lane-shifted (C_in, TT) slice placed at
    # sublane rows [k*C_in, (k+1)*C_in).  Every row is overwritten each step.
    base = left - pad
    for k in range(kernel_size):
        rhs_ref[k * C_in:(k + 1) * C_in, :] = (
            full_x[:, base + k * dilation: base + k * dilation + TT])

    # Single MXU matmul over the folded K*C_in contraction, f32 accumulation.
    acc = jnp.dot(w_ref[...], rhs_ref[...].astype(w_ref.dtype),
                  preferred_element_type=jnp.float32)             # (C_out, TT)
    # Bias added once at the final store.
    o_ref[0] = (acc + b_ref[...]).astype(o_ref.dtype)


def tcn_layer_pallas(x, weight, bias, *, kernel_size=3, dilation=1,
                     time_tile=2048, compute_dtype=None):
    """Causal TCN layer.  x: (B, C_in, T), weight: (C_out, C_in, K), bias: (C_out,)."""
    B, C_in, T = x.shape
    C_out = weight.shape[0]
    K = kernel_size
    pad = (K - 1) * dilation
    LANE = 128

    if compute_dtype is None:
        compute_dtype = x.dtype

    def _round_up(a, m):
        return ((a + m - 1) // m) * m

    # Halo block width: lane-aligned window covering the causal history, capped at T.
    HL = min(_round_up(max(pad, 1), LANE), T)

    # Time tile: whole sequence if small, otherwise a lane-aligned multiple of HL
    # so that the halo of tile t is exactly the tail of halo-block (t-1).
    if T <= max(time_tile, HL):
        TT = T
    else:
        TT = _round_up(min(time_tile, T), HL)
    NT = pl.cdiv(T, TT)
    halo_blocks_per_tile = max(TT // HL, 1)

    # Fold the K taps into the contraction: w2[co, k*C_in + ci] = weight[co, ci, k].
    w2 = jnp.transpose(weight, (0, 2, 1)).reshape(C_out, K * C_in).astype(compute_dtype)
    b2 = bias.reshape(C_out, 1).astype(jnp.float32)

    kernel = functools.partial(_tcn_kernel, kernel_size=K, dilation=dilation, pad=pad)

    return pl.pallas_call(
        kernel,
        out_shape=jax.ShapeDtypeStruct((B, C_out, T), x.dtype),
        grid_spec=pltpu.PrefetchScalarGridSpec(
            num_scalar_prefetch=0,
            grid=(B, NT),
            in_specs=[
                # Current time tile of x (lane-dense, no HBM pre-padding).
                pl.BlockSpec((1, C_in, TT), lambda b, t: (b, 0, t)),
                # Halo: the HL columns immediately before this tile (previous
                # halo-block; clamped to block 0 and zeroed in-kernel for t == 0).
                pl.BlockSpec(
                    (1, C_in, HL),
                    lambda b, t: (b, 0, jnp.maximum(t * halo_blocks_per_tile - 1, 0))),
                # Folded weight and bias: identical (and tiny) for every grid step.
                pl.BlockSpec((C_out, K * C_in), lambda b, t: (0, 0)),
                pl.BlockSpec((C_out, 1), lambda b, t: (0, 0)),
            ],
            out_specs=pl.BlockSpec((1, C_out, TT), lambda b, t: (b, 0, t)),
            scratch_shapes=[pltpu.VMEM((K * C_in, TT), x.dtype)],
        ),
        compiler_params=pltpu.CompilerParams(
            dimension_semantics=("parallel", "parallel")),
    )(x, x, w2, b2)


def tcn_layer_ref(x, weight, bias, *, kernel_size=3, dilation=1):
    """Pure-JAX reference matching PyTorch Conv1d(padding=(K-1)*dil) + [:, :, :T]."""
    pad = (kernel_size - 1) * dilation
    out = lax.conv_general_dilated(
        x, weight, window_strides=(1,), padding=[(pad, pad)],
        rhs_dilation=(dilation,), dimension_numbers=("NCH", "OIH", "NCH"))
    out = out + bias.reshape(1, -1, 1)
    return out[:, :, : x.shape[2]]


if __name__ == "__main__":
    key = jax.random.PRNGKey(0)

    # Config 1: small shapes matching the module defaults (single time tile).
    B, C_in, C_out, T = 2, 4, 8, 16
    K, DIL = 3, 1
    kx, kw, kb, key = jax.random.split(key, 4)
    bound = 1.0 / jnp.sqrt(jnp.float32(C_in * K))
    x = jax.random.normal(kx, (B, C_in, T), dtype=jnp.float32)
    w = jax.random.uniform(kw, (C_out, C_in, K), jnp.float32, -bound, bound)
    b = jax.random.uniform(kb, (C_out,), jnp.float32, -bound, bound)

    out = jax.block_until_ready(tcn_layer_pallas(x, w, b, kernel_size=K, dilation=DIL))
    ref = tcn_layer_ref(x, w, b, kernel_size=K, dilation=DIL)
    assert out.shape == (B, C_out, T)
    assert jnp.allclose(out, ref, atol=1e-5, rtol=1e-5)

    # Config 2: longer dilated sequence exercising the (B, time-tiles) halo path.
    T2, K2, DIL2 = 256, 3, 2
    kx, kw, kb, key = jax.random.split(key, 4)
    x2 = jax.random.normal(kx, (B, C_in, T2), dtype=jnp.float32)
    w2 = jax.random.uniform(kw, (C_out, C_in, K2), jnp.float32, -bound, bound)
    b2 = jax.random.uniform(kb, (C_out,), jnp.float32, -bound, bound)
    out2 = jax.block_until_ready(
        tcn_layer_pallas(x2, w2, b2, kernel_size=K2, dilation=DIL2, time_tile=128))
    ref2 = tcn_layer_ref(x2, w2, b2, kernel_size=K2, dilation=DIL2)
    assert jnp.allclose(out2, ref2, atol=1e-5, rtol=1e-5)

    # Optional bf16-operand path (v6e/v7x MXU throughput); f32 accumulation kept.
    out_bf = jax.block_until_ready(
        tcn_layer_pallas(x2, w2, b2, kernel_size=K2, dilation=DIL2,
                         time_tile=128, compute_dtype=jnp.bfloat16))
    assert jnp.allclose(out_bf, ref2, atol=5e-2, rtol=5e-2)

    print("KERNEL_OK")
</pallas_src>

<mosaic_0001>
module attributes {stable_mosaic.version = 11 : i64} {
  func.func @_tcn_kernel(%arg0: i32, %arg1: i32, %arg2: memref<1x4x16xf32, #tpu.memory_space<vmem>>, %arg3: memref<1x4x16xf32, #tpu.memory_space<vmem>>, %arg4: memref<8x12xf32, #tpu.memory_space<vmem>>, %arg5: memref<8x1xf32, #tpu.memory_space<vmem>>, %arg6: memref<1x8x16xf32, #tpu.memory_space<vmem>>, %arg7: memref<12x16xf32, #tpu.memory_space<vmem>>) attributes {dimension_semantics = [#tpu.dimension_semantics<parallel>, #tpu.dimension_semantics<parallel>], iteration_bounds = array<i64: 2, 1>, scalar_prefetch = 0 : i64, scratch_operands = 1 : i64, tpu.core_type = #tpu.core_type<tc>, window_params = [{transform_indices = @transform_0, window_bounds = array<i64: 1, 4, 16>}, {transform_indices = @transform_1, window_bounds = array<i64: 1, 4, 16>}, {pipeline_mode = #tpu.pipeline_mode<synchronous>, transform_indices = @transform_2, window_bounds = array<i64: 8, 12>}, {pipeline_mode = #tpu.pipeline_mode<synchronous>, transform_indices = @transform_3, window_bounds = array<i64: 8, 1>}, {transform_indices = @transform_4, window_bounds = array<i64: 1, 8, 16>}]} {
    %c0 = arith.constant 0 : index
    %c0_0 = arith.constant 0 : index
    %c0_1 = arith.constant 0 : index
    %0 = vector.load %arg2[%c0, %c0_0, %c0_1] : memref<1x4x16xf32, #tpu.memory_space<vmem>>, vector<1x4x16xf32>
    %1 = vector.shape_cast %0 : vector<1x4x16xf32> to vector<4x16xf32>
    %c0_2 = arith.constant 0 : index
    %c0_3 = arith.constant 0 : index
    %c0_4 = arith.constant 0 : index
    %2 = vector.load %arg3[%c0_2, %c0_3, %c0_4] : memref<1x4x16xf32, #tpu.memory_space<vmem>>, vector<1x4x16xf32>
    %3 = vector.shape_cast %2 : vector<1x4x16xf32> to vector<4x16xf32>
    %c0_i32 = arith.constant 0 : i32
    %4 = arith.cmpi eq, %arg1, %c0_i32 : i32
    %cst = arith.constant 0.000000e+00 : f32
    %5 = vector.broadcast %cst : f32 to vector<4x16xf32>
    %6 = arith.select %4, %5, %3 : vector<4x16xf32>
    %7 = tpu.concatenate %6, %1 in 1 : vector<4x16xf32>, vector<4x16xf32> -> vector<4x32xf32>
    %8 = vector.extract_strided_slice %7 {offsets = [0, 14], sizes = [4, 16], strides = [1, 1]} : vector<4x32xf32> to vector<4x16xf32>
    %c0_5 = arith.constant 0 : index
    %c0_6 = arith.constant 0 : index
    %9 = vector.load %arg7[%c0_5, %c0_6] : memref<12x16xf32, #tpu.memory_space<vmem>>, vector<4x16xf32>
    tpu.vector_store %arg7[%c0_5, %c0_6], %8 {strides = array<i32>} : memref<12x16xf32, #tpu.memory_space<vmem>>, vector<4x16xf32>,
    %10 = vector.extract_strided_slice %7 {offsets = [0, 15], sizes = [4, 16], strides = [1, 1]} : vector<4x32xf32> to vector<4x16xf32>
    %c4 = arith.constant 4 : index
    %c0_7 = arith.constant 0 : index
    %11 = vector.load %arg7[%c4, %c0_7] : memref<12x16xf32, #tpu.memory_space<vmem>>, vector<4x16xf32>
    tpu.vector_store %arg7[%c4, %c0_7], %10 {strides = array<i32>} : memref<12x16xf32, #tpu.memory_space<vmem>>, vector<4x16xf32>,
    %12 = vector.extract_strided_slice %7 {offsets = [0, 16], sizes = [4, 16], strides = [1, 1]} : vector<4x32xf32> to vector<4x16xf32>
    %c8 = arith.constant 8 : index
    %c0_8 = arith.constant 0 : index
    %13 = vector.load %arg7[%c8, %c0_8] : memref<12x16xf32, #tpu.memory_space<vmem>>, vector<4x16xf32>
    tpu.vector_store %arg7[%c8, %c0_8], %12 {strides = array<i32>} : memref<12x16xf32, #tpu.memory_space<vmem>>, vector<4x16xf32>,
    %c0_9 = arith.constant 0 : index
    %c0_10 = arith.constant 0 : index
    %14 = vector.load %arg4[%c0_9, %c0_10] : memref<8x12xf32, #tpu.memory_space<vmem>>, vector<8x12xf32>
    %c0_11 = arith.constant 0 : index
    %c0_12 = arith.constant 0 : index
    %15 = vector.load %arg7[%c0_11, %c0_12] : memref<12x16xf32, #tpu.memory_space<vmem>>, vector<12x16xf32>
    %cst_13 = arith.constant dense<0.000000e+00> : vector<8x16xf32>
    %16 = tpu.matmul %14, %15, %cst_13 {dimension_numbers = #tpu.dot_dimension_numbers<[1], [0], [0], [1], [0, 0, 1, 1], [], []>} : vector<8x12xf32>, vector<12x16xf32>, vector<8x16xf32> -> vector<8x16xf32>
    %c0_14 = arith.constant 0 : index
    %c0_15 = arith.constant 0 : index
    %17 = vector.load %arg5[%c0_14, %c0_15] : memref<8x1xf32, #tpu.memory_space<vmem>>, vector<8x1xf32>
    %18 = vector.broadcast %17 : vector<8x1xf32> to vector<8x16xf32>
    %19 = arith.addf %16, %18 : vector<8x16xf32>
    %c0_16 = arith.constant 0 : index
    %c0_17 = arith.constant 0 : index
    %c0_18 = arith.constant 0 : index
    %20 = vector.load %arg6[%c0_16, %c0_17, %c0_18] : memref<1x8x16xf32, #tpu.memory_space<vmem>>, vector<1x8x16xf32>
    %21 = vector.shape_cast %20 : vector<1x8x16xf32> to vector<8x16xf32>
    %22 = vector.shape_cast %19 : vector<8x16xf32> to vector<1x8x16xf32>
    tpu.vector_store %arg6[%c0_16, %c0_17, %c0_18], %22 {strides = array<i32>} : memref<1x8x16xf32, #tpu.memory_space<vmem>>, vector<1x8x16xf32>,
    return
  }
  func.func @transform_0(%arg0: i32, %arg1: i32) -> (i32, i32, i32) {
    %c0_i32 = arith.constant 0 : i32
    %c0_i32_0 = arith.constant 0 : i32
    return %arg0, %c0_i32, %arg1 : i32, i32, i32
  }
  func.func @transform_1(%arg0: i32, %arg1: i32) -> (i32, i32, i32) {
    %c1_i32 = arith.constant 1 : i32
    %0 = arith.muli %arg1, %c1_i32 : i32
    %c1_i32_0 = arith.constant 1 : i32
    %1 = arith.subi %0, %c1_i32_0 : i32
    %c0_i32 = arith.constant 0 : i32
    %2 = arith.maxsi %1, %c0_i32 : i32
    %c0_i32_1 = arith.constant 0 : i32
    %c0_i32_2 = arith.constant 0 : i32
    return %arg0, %c0_i32_1, %2 : i32, i32, i32
  }
  func.func @transform_2(%arg0: i32, %arg1: i32) -> (i32, i32) {
    %c0_i32 = arith.constant 0 : i32
    %c0_i32_0 = arith.constant 0 : i32
    %c0_i32_1 = arith.constant 0 : i32
    return %c0_i32, %c0_i32_0 : i32, i32
  }
  func.func @transform_3(%arg0: i32, %arg1: i32) -> (i32, i32) {
    %c0_i32 = arith.constant 0 : i32
    %c0_i32_0 = arith.constant 0 : i32
    %c0_i32_1 = arith.constant 0 : i32
    return %c0_i32, %c0_i32_0 : i32, i32
  }
  func.func @transform_4(%arg0: i32, %arg1: i32) -> (i32, i32, i32) {
    %c0_i32 = arith.constant 0 : i32
    %c0_i32_0 = arith.constant 0 : i32
    return %arg0, %c0_i32, %arg1 : i32, i32, i32
  }
}

</mosaic_0001>

<bundles_post_ra>
// kernel: tpu_custom_call.1
= control target key start
LH: loop header
LB: loop body
LE: loop exit
PB: predicated region body
PF: predicated region fallthrough
CT: control target
= control target key end

     0   :  { %9 = vsyncpa [#allocation4], 0  ;;  %s932_s0 = inlined_call_operand.vmem [shape: f32[2,4,16], index: 0, kind: input, shape index: {}]   ;;  %s933_s1 = inlined_call_operand.hbm [shape: f32[2,4,16], index: 1, kind: input, shape index: {}]   ;;  %s934_s2 = inlined_call_operand.vmem [shape: f32[8,12], index: 2, kind: input, shape index: {}]   ;;  %s935_s3 = inlined_call_operand.vmem [shape: f32[8,1], index: 3, kind: input, shape index: {}]   ;;  %s936_s4 = inlined_call_operand.hbm [shape: f32[2,8,16], index: 4, kind: output, shape index: {}]  }
   0x1   :  { %11 = vsyncpa [#allocation4 + $0x1], 0 }
   0x2   :  { %12 = vsyncpa [#allocation5], 0 }
   0x3   :  { %14 = vsyncpa [#allocation5 + $0x1], 0  ;;  %s747_s15 = smov 0   ;;  %s749_s16 = smov 0  }
   0x4   :  { %s751_s17 = smov 0   ;;  %s753_s18 = smov 0  }
   0x5   :  { %s755_s19 = smov 0   ;;  %s757_s20 = smov 0  }
   0x6 LB: > { %s495_s21 = sadd.s32 4294967295, %s709_s20   ;;  %s496_s22 = sadd.s32 4294967294, %s709_s20   ;;  %s709_s20 = sphi %s757_s20, %s20_s20   ;;  %s705_s19 = sphi %s755_s19, %s952_s19   ;;  %s701_s18 = sphi %s753_s18, %s951_s18   ;;  %s697_s17 = sphi %s751_s17, %s950_s17   ;;  %s693_s16 = sphi %s749_s16, %s949_s16   ;;  %s689_s15 = sphi %s747_s15, %s948_s15  }
   0x7   : > { %s32_s23 = sadd.s32 1, %s705_s19  ;;  %s75_s24 = sadd.s32 1, %s697_s17 }
   0x8   : > { %p34_p0 = scmp.ge.s32.totalorder %s32_s23, 2  ;;  %p82_p1 = scmp.ne.s32.totalorder %s697_s17, %s693_s16 }
   0x9   : > { %p83_p2 = scmp.eq.s32.totalorder %s709_s20, 0  ;;  %p88_p3 = scmp.ne.s32.totalorder %s693_s16, %s689_s15 }
   0xa   : > { %s954_s23 = smov (%p34_p0, %s32_s23), 0  ;;  %p89_p5 = scmp.eq.s32.totalorder %s495_s21, 0 }
   0xb   : > { %p788_p4 = por %p83_p2, %p82_p1  ;;  %s70_s26 = ssub.s32 %s705_s19, %s954_s23 }
   0xc   : > { %p156_p6 = scmp.eq.s32.totalorder %s495_s21, 1  ;;  %p73_p7 = scmp.eq.s32.totalorder %s70_s26, 0 }
   0xd   : > { %p794_p8 = por %p89_p5, %p88_p3  ;;  %p162_p10 = scmp.eq.s32.totalorder %s496_s22, 1 }
   0xe   : > { %p798_p9 = por %p156_p6, %p82_p1  ;;  %p537_p13 = scmp.lt.s32.totalorder %s709_s20, 2 }
   0xf   : > { %s803_s29 = scalar_select %p73_p7, %s697_s17, %s75_s24  }
  0x10   : > { %s940_s28 = scalar_select %p798_p9, 1, 0 }
  0x11   : > { %p805_p11 = por %p162_p10, %p88_p3  ;;  %s198_s5 = sand.u32 1, %s697_s17  }
  0x12   : > { %s499_s6 = sshll.u32 %s198_s5, 2  ;;  %s500_s7 = sshll.u32 %s705_s19, 6 }
  0x13   : > { %s941_s30 = scalar_select %p805_p11, 1, 0 }
  0x14   : > { %s816_s10 = scalar_lea.hbm %s933_s1, %s500_s7  ;;  %s202_s11 = scalar_lea.vmem [#allocation3], %s499_s6 }
  0x15   : > { %s213_s12 = sshll.u32 %s202_s11, 4  ;;  %p822_p0 = pnand %p537_p13, %p788_p4  ;;  %s818_s12 = int_to_ptr.vmem [resolvable:$true] %s213_s12 }
  0x16   : > { %s199_s14 = scalar_lea.sflag [#allocation4], %s198_s5  ;;  %s597_s21 = scalar_lea.hbm %s816_s10, 64 }
  0x17   : > { %p598_p3 = scmp.ne.s32.totalorder %s816_s10, %s597_s21  ;;  %p599_p5 = pneg %p822_p0 }
  0x18   : > { %s602_s25 = scalar_lea.hbm %s933_s1, 128  ;;  %p603_p4 = scmp.lt.u32.totalorder %s816_s10, %s933_s1 }
  0x19   : > { %p600_p6 = pnand %p599_p5, %p598_p3  ;;  %p604_p10 = scmp.lt.u32.totalorder %s602_s25, %s597_s21 }
  0x1a   : > { %p606_p12 = scmp.lt.u32.totalorder %s597_s21, %s816_s10 }
  0x1b   : > { %p601_p7 = pneg %p600_p6  ;;  %p605_p13 = por %p604_p10, %p603_p4 }
  0x1d   : > { %p607_p1 = por %p606_p12, %p605_p13 }
  0x1f   : > { %p608_p2 = pnand %p607_p1, %p601_p7 }
  0x21   : > { %611 = shalt.err (!%p608_p2)
}
  0x22   : > { %s612_s5 = scalar_lea.vmem %s818_s12, 64  ;;  %s711_s7 = smov [#allocation3]  }
  0x23   : > { %p613_p3 = scmp.ne.s32.totalorder %s818_s12, %s612_s5  ;;  %s617_s8 = sshll.u32 %s711_s7, 4  ;;  %s618_s8 = int_to_ptr.vmem [resolvable:$false] %s617_s8 }
  0x24   : > { %s619_s9 = scalar_lea.vmem %s618_s8, 128  ;;  %p620_p9 = scmp.lt.s32.totalorder %s818_s12, %s618_s8 }
  0x25   : > { %p615_p6 = pnand %p613_p3, %p599_p5  ;;  %p621_p4 = scmp.lt.s32.totalorder %s619_s9, %s612_s5 }
  0x27   : > { %p616_p11 = pneg %p615_p6  ;;  %p622_p10 = por %p621_p4, %p620_p9 }
  0x29   : > { %p623_p12 = pnand %p622_p10, %p616_p11 }
  0x2b   : > { %626 = shalt.err (!%p623_p12)
}
  0x2c   : > { %532 = dma.hbm_to_vmem [thread:$0]  (!%p822_p0), %s816_s10, 64, %s818_s12, %s199_s14  }
  0x2d   : > { %p943_p1 = scmp.lt.s32.totalorder %s709_s20, 3  ;;  %p944_p2 = scmp.ge.s32.totalorder %s709_s20, 1 }
  0x2f   : > { %p219_p5 = pnand %p944_p2, %p943_p1 }
  0x30   : > { %s858_s11 = sand.u32 (!%p219_p5), 1, %s693_s16  }
  0x31   : > { %222 = sbr.rel (%p219_p5) target bundleno = 540 (0x21c), region = 36  ;;  %s225_s21 = scalar_lea.sflag (!%p219_p5), [#allocation4], %s858_s11 }
  0x38   : > { %680 = dma.done.wait (%p794_p8), %s225_s21, 64  }
  0x39   : > { %682 = vsyncadd (%p794_p8), %s225_s21, 4294967232  ;;  %p260_p9 = scmp.lt.s32.totalorder %s701_s18, 1  ;;  %s712_s24 = smov 16   ;;  %v713_v1 = vmov 0.0|0.0   ;;  %vm281_vm0 = vcmask 130048   ;;  %vm716_vm1 = vmmov 0  }
  0x3a   : > { %521 = vmatprep.subr.bf16.mxu0 %v713_v1  ;;  %s714_s27 = smov 113   ;;  %s715_s25 = smov 114   ;;  %v717_v4 = vmov 0.0   ;;  %v300_v5 = vld [vmem:[%s935_s3] sm:$0xff]  ;;  %v719_v6 = vmov 0   ;;  %vm287_vm2 = vcmask 125952  }
  0x3b   : > { %s261_s13 = scalar_select %p260_p9, %s701_s18, 1  ;;  %518 = vmatprep.mubr.msk.f32.mxu0 %vm716_vm1, %v717_v4  ;;  %596 = vset.pattern.permute.xlu0 %v719_v6  ;;  %vm310_vm3 = vcmask 1043456   ;;  %vm720_vm4 = vmmov 1   ;;  %v297_v13 = vld [vmem:[%s934_s2] sm:$0xff]  ;;  %vm306_vm6 = vcmask 97280  }
  0x3c   : > { %s718_s26 = smov 112   ;;  %vm523_vm5 = vmpackc.low %vm310_vm3, %vm720_vm4  ;;  %s503_s9 = sshll.u32 %s858_s11, 3 }
  0x3d   : > { %s504_s10 = sshll.u32 %s261_s13, 2  ;;  %s508_s21 = sshll.u32 %s701_s18, 7 }
  0x3e   : > { %s266_s22 = scalar_lea.vmem %s932_s0, %s504_s10  ;;  %s259_s13 = scalar_lea.vmem [#allocation6], %s503_s9 }
  0x3f   : > { %v270_v0 = vld [vmem:[%s266_s22] sm:$0xf]  ;;  %s400_s10 = sshll.u32 %s259_s13, 4  ;;  %s882_s22 = scalar_lea.hbm %s936_s4, %s508_s21  ;;  %s884_s10 = int_to_ptr.vmem [resolvable:$true] %s400_s10 }
  0x40   : > { %278 = vrot.lane.b32.xlu0 %v270_v0, %s712_s24  ;;  %s386_s24 = scalar_lea.sflag [#allocation5], %s858_s11  ;;  %p945_p11 = scmp.ne.s32.totalorder %s940_s28, 0 }
  0x41   : > { %s721_s18 = smov [#allocation6]  }
  0xb2   : > { %v279_v2 = vpop.permute.xlu0 %278 }
  0xb3   : > { %v282_v3 = vsel %vm281_vm0, 0.0, %v279_v2 }
  0xb4   : > { %289 = vrot.lane.b32.xlu1 %v282_v3, %s714_s27  ;;  %284 = vrot.lane.b32.xlu0 %v282_v3, %s715_s25  ;;  %s627_s27 = scalar_lea.vmem %s884_s10, 128  ;;  %s631_s25 = sshll.u32 %s721_s18, 4  ;;  %s632_s25 = int_to_ptr.vmem [resolvable:$false] %s631_s25 }
  0xb5   : > { %p628_p8 = scmp.ne.s32.totalorder %s884_s10, %s627_s27  ;;  %p634_p13 = scmp.lt.s32.totalorder %s884_s10, %s632_s25 }
  0xb7   : > { %p629_p0 = pnand %p628_p8, %p945_p11 }
  0xb8   : > { %293 = vrot.lane.b32.xlu1 %v282_v3, %s718_s26  ;;  %303 = vperm.xlu0 %596, %v300_v5   ;;  %s633_s26 = scalar_lea.vmem %s632_s25, 256 }
  0xb9   : > { %p630_p7 = pneg %p629_p0  ;;  %p635_p3 = scmp.lt.s32.totalorder %s633_s26, %s627_s27 }
  0xbb   : > { %p636_p6 = por %p635_p3, %p634_p13 }
  0xbd   : > { %p637_p4 = pnand %p636_p6, %p630_p7 }
 0x126   : > { %v290_v7 = vpop.permute.xlu1 %289  ;;  %v285_v8 = vpop.permute.xlu0 %284 }
 0x127   : > { %292 = vst.msk [vmem:[#allocation2 + $0x4] sm:$0xf] %vm287_vm2, %v290_v7  ;;  %288 = vst.msk [vmem:[#allocation2] sm:$0xf] %vm287_vm2, %v285_v8 }
 0x12a   : > { %v294_v9 = vpop.permute.xlu1 %293 }
 0x12b   : > { %296 = vst.msk [vmem:[#allocation2 + $0x8] sm:$0xf] %vm287_vm2, %v294_v9 }
 0x12e   : > { %v298_v10 = vld [vmem:[#allocation2] sm:$0xff] }
 0x132   : > { %v299_v11 = vld [vmem:[#allocation2 + $0x8] sm:$0xf] }
 0x133   : > { %v522_v12 = vpack.c.bf16 %v299_v11, %v298_v10 }
 0x135   : > { %524 = vmatpush3.bf16.msk.msra.mxu0 %vm523_vm5, %v522_v12 }
 0x137   : > { %v304_v14 = vpop.permute.xlu0 %303 }
 0x138   : > { %519 = vmatmul.mubr.msk.f32.vlgmr.msra.gmra.mrb[0].mxu0 %vm306_vm6, %v297_v13 }
 0x20b   : > { %v380_v15 = vpop.f32.mrb[0].mxu0 }
 0x20c   : > { %v381_v16 = vadd.f32 %v380_v15, %v304_v14  ;;  %v520_v17 = vpop.f32.mrb[1].mxu0 }
 0x20e   : > { %384 = vst.msk [vmem:[%s259_s13] sm:$0xff] %vm281_vm0, %v381_v16 }
 0x20f   : > { %640 = shalt.err (!%p637_p4)
}
 0x210   : > { %s641_s11 = scalar_lea.hbm %s882_s22, 128  ;;  %s645_s7 = scalar_lea.hbm %s936_s4, 256 }
 0x211   : > { %p642_p10 = scmp.ne.s32.totalorder %s882_s22, %s641_s11  ;;  %p646_p2 = scmp.lt.u32.totalorder %s882_s22, %s936_s4 }
 0x212   : > { %p647_p5 = scmp.lt.u32.totalorder %s645_s7, %s641_s11  ;;  %p649_p8 = scmp.lt.u32.totalorder %s641_s11, %s882_s22 }
 0x213   : > { %p643_p12 = pnand %p642_p10, %p945_p11 }
 0x214   : > { %p648_p9 = por %p647_p5, %p646_p2 }
 0x215   : > { %p644_p1 = pneg %p643_p12 }
 0x216   : > { %p650_p0 = por %p649_p8, %p648_p9 }
 0x218   : > { %p651_p7 = pnand %p650_p0, %p644_p1 }
 0x21a   : > { %654 = shalt.err (!%p651_p7)
}
 0x21b   : > { %527 = dma.vmem_to_hbm [thread:$0]  (%p945_p11), %s884_s10, 128, %s882_s22, %s386_s24  }
 0x21c PF: > { %s412_s21 = sand.u32 1, %s689_s15   ;;  %p946_p13 = scmp.ne.s32.totalorder %s941_s30, 0 }
 0x21d   : > { %p947_p3 = scmp.ge.s32.totalorder %s709_s20, 2  ;;  %s413_s13 = scalar_lea.sflag [#allocation5], %s412_s21 }
 0x21f   : > { %p534_p6 = pnand %p947_p3, %p946_p13 }
 0x221   : > { %684 = dma.done.wait (!%p534_p6), %s413_s13, 128  }
 0x222   : > { %686 = vsyncadd (!%p534_p6), %s413_s13, 4294967168  ;;  %s20_s20 = sadd.s32 1, %s709_s20   ;;  %s948_s15 = smov %s693_s16 }
 0x223   : > { %p17_p4 = scmp.ge.s32.totalorder %s20_s20, 4   ;;  %s949_s16 = smov %s697_s17 }
 0x224   : > { %s950_s17 = smov %s803_s29  ;;  %s951_s18 = smov %s705_s19 }
 0x225   : > { %s952_s19 = smov %s954_s23  ;;  %19 = sbr.rel (!%p17_p4) target bundleno = 6 (0x6), region = 84 }
 0x22c   :  { %418 = vsyncpa [#allocation4], 1 }
 0x22d   :  { %420 = vsyncpa [#allocation4 + $0x1], 1 }
 0x22e   :  { %421 = vsyncpa [#allocation5], 1 }
 0x22f   :  { %423 = vsyncpa [#allocation5 + $0x1], 1 }

</bundles_post_ra>
